<compile_context>
chip_gen: v7x
topology: tpu7x:2x2x1
jax: 0.10.0
libtpu: 0.0.40
codegen_flags: <defaults>
</compile_context>

<pallas_src>
import jax
import jax.numpy as jnp
from jax.experimental import pallas as pl
from jax.experimental.pallas import tpu as pltpu


def _mlp_kernel(x_ref, w1_ref, b1_ref, w2_ref, b2_ref, w3_ref, b3_ref, o_ref):
    # x_ref: (7, TB) in compute dtype (batch on lanes). Weights: (out, in) in
    # compute dtype, resident across grid steps. Biases: (out, 1) f32.
    x = x_ref[...]
    w1 = w1_ref[...]
    w2 = w2_ref[...]
    w3 = w3_ref[...]
    b1 = b1_ref[...]
    b2 = b2_ref[...]
    b3 = b3_ref[...]

    # Layer 1: (32,7) @ (7,TB) -> (32,TB), f32 accumulate, bias + tanh in f32.
    h1 = jnp.tanh(jnp.dot(w1, x, preferred_element_type=jnp.float32) + b1)
    # Layer 2: (32,32) @ (32,TB) -> (32,TB).
    h2 = jnp.tanh(
        jnp.dot(w2, h1.astype(w2.dtype), preferred_element_type=jnp.float32) + b2
    )
    # Layer 3: (11,32) @ (32,TB) -> (11,TB), sigmoid in f32.
    logits = jnp.dot(w3, h2.astype(w3.dtype), preferred_element_type=jnp.float32) + b3
    o_ref[...] = jax.nn.sigmoid(logits)


def _round_up(n, m):
    return -(-n // m) * m


def ai_aircraft_net_forward(x, params, *, compute_dtype=jnp.bfloat16, batch_tile=512):
    """AIAircraftNet forward pass via a single gridded Pallas kernel.

    x:      (B, 7) array (any float dtype; cast to float32 like input_data.float()).
    params: dict with PyTorch-layout weights:
              w1 (32,7), b1 (32,), w2 (32,32), b2 (32,), w3 (11,32), b3 (11,)
    returns (B, 11) float32.
    """
    B = x.shape[0]
    x32 = x.astype(jnp.float32)  # matches input_data.float()

    # Batch tile: multiple of 128 (lane axis), capped so VMEM stays small on every
    # generation (a 512-wide tile is ~0.3 MiB total incl. intermediates).
    lane = 128
    b_lane = _round_up(B, lane)
    tb = min(batch_tile, b_lane)
    b_pad = _round_up(b_lane, tb)

    # Transpose + pad batch onto the lane axis; cast MXU operands to bf16 once.
    xt = jnp.pad(x32.T.astype(compute_dtype), ((0, 0), (0, b_pad - B)))
    w1 = params["w1"].astype(compute_dtype)          # (32, 7)
    w2 = params["w2"].astype(compute_dtype)          # (32, 32)
    w3 = params["w3"].astype(compute_dtype)          # (11, 32)
    b1 = params["b1"].astype(jnp.float32).reshape(32, 1)
    b2 = params["b2"].astype(jnp.float32).reshape(32, 1)
    b3 = params["b3"].astype(jnp.float32).reshape(11, 1)

    grid = (b_pad // tb,)
    const = lambda i: (0, 0)  # weights/biases resident in VMEM across grid steps

    itemsize = jnp.dtype(compute_dtype).itemsize
    weight_bytes = (32 * 7 + 32 * 32 + 11 * 32) * itemsize + (32 + 32 + 11) * 4
    cost = pl.CostEstimate(
        flops=2 * b_pad * (7 * 32 + 32 * 32 + 32 * 11),
        transcendentals=b_pad * (32 + 32 + 11),
        bytes_accessed=b_pad * 7 * itemsize + b_pad * 11 * 4 + weight_bytes,
    )

    y_t = pl.pallas_call(
        _mlp_kernel,
        out_shape=jax.ShapeDtypeStruct((11, b_pad), jnp.float32),
        grid=grid,
        in_specs=[
            pl.BlockSpec((7, tb), lambda i: (0, i)),   # x^T, tiled over batch
            pl.BlockSpec((32, 7), const),              # w1
            pl.BlockSpec((32, 1), const),              # b1
            pl.BlockSpec((32, 32), const),             # w2
            pl.BlockSpec((32, 1), const),              # b2
            pl.BlockSpec((11, 32), const),             # w3
            pl.BlockSpec((11, 1), const),              # b3
        ],
        out_specs=pl.BlockSpec((11, tb), lambda i: (0, i)),
        compiler_params=pltpu.CompilerParams(dimension_semantics=("parallel",)),
        cost_estimate=cost,
    )(xt, w1, b1, w2, b2, w3, b3)

    # Un-transpose and drop batch padding in the wrapper (layout plumbing only).
    return y_t[:, :B].T


def init_params(key):
    """Deterministic synthetic parameters in PyTorch nn.Linear layout (out, in)."""
    ks = jax.random.split(key, 6)

    def lin(kw, kb, fan_in, fan_out):
        # PyTorch Linear default init: U(-1/sqrt(fan_in), 1/sqrt(fan_in)).
        bound = 1.0 / jnp.sqrt(jnp.float32(fan_in))
        w = jax.random.uniform(kw, (fan_out, fan_in), jnp.float32, -bound, bound)
        b = jax.random.uniform(kb, (fan_out,), jnp.float32, -bound, bound)
        return w, b

    w1, b1 = lin(ks[0], ks[1], 7, 32)
    w2, b2 = lin(ks[2], ks[3], 32, 32)
    w3, b3 = lin(ks[4], ks[5], 32, 11)
    return {"w1": w1, "b1": b1, "w2": w2, "b2": b2, "w3": w3, "b3": b3}


def _reference(x, p):
    xf = x.astype(jnp.float32)
    h1 = jnp.tanh(xf @ p["w1"].T + p["b1"])
    h2 = jnp.tanh(h1 @ p["w2"].T + p["b2"])
    return jax.nn.sigmoid(h2 @ p["w3"].T + p["b3"])


if __name__ == "__main__":
    key = jax.random.PRNGKey(0)
    k_x, k_p = jax.random.split(key)

    B = 8  # small batch
    x = jax.random.normal(k_x, (B, 7), dtype=jnp.float32)
    params = init_params(k_p)

    y_ref = _reference(x, params)

    # Exactness check with f32 MXU operands.
    y_f32 = jax.block_until_ready(
        ai_aircraft_net_forward(x, params, compute_dtype=jnp.float32)
    )
    assert y_f32.shape == (B, 11)
    assert jnp.allclose(y_f32, y_ref, atol=1e-5, rtol=1e-5)

    # Default (performance) path: bf16 MXU operands, f32 accumulate/activations.
    y = jax.block_until_ready(ai_aircraft_net_forward(x, params))
    assert y.shape == (B, 11)
    assert jnp.allclose(y, y_ref, atol=2e-2)

    print("KERNEL_OK")
</pallas_src>

<mosaic_0001>
module attributes {stable_mosaic.version = 11 : i64} {
  func.func @_mlp_kernel(%arg0: i32, %arg1: memref<7x128xf32, #tpu.memory_space<vmem>>, %arg2: memref<32x7xf32, #tpu.memory_space<vmem>>, %arg3: memref<32x1xf32, #tpu.memory_space<vmem>>, %arg4: memref<32x32xf32, #tpu.memory_space<vmem>>, %arg5: memref<32x1xf32, #tpu.memory_space<vmem>>, %arg6: memref<11x32xf32, #tpu.memory_space<vmem>>, %arg7: memref<11x1xf32, #tpu.memory_space<vmem>>, %arg8: memref<11x128xf32, #tpu.memory_space<vmem>>) attributes {dimension_semantics = [#tpu.dimension_semantics<parallel>], iteration_bounds = array<i64: 1>, scalar_prefetch = 0 : i64, scratch_operands = 0 : i64, tpu.core_type = #tpu.core_type<tc>, window_params = [{transform_indices = @transform_0, window_bounds = array<i64: 7, 128>}, {pipeline_mode = #tpu.pipeline_mode<synchronous>, transform_indices = @transform_1, window_bounds = array<i64: 32, 7>}, {pipeline_mode = #tpu.pipeline_mode<synchronous>, transform_indices = @transform_2, window_bounds = array<i64: 32, 1>}, {pipeline_mode = #tpu.pipeline_mode<synchronous>, transform_indices = @transform_3, window_bounds = array<i64: 32, 32>}, {pipeline_mode = #tpu.pipeline_mode<synchronous>, transform_indices = @transform_4, window_bounds = array<i64: 32, 1>}, {pipeline_mode = #tpu.pipeline_mode<synchronous>, transform_indices = @transform_5, window_bounds = array<i64: 11, 32>}, {pipeline_mode = #tpu.pipeline_mode<synchronous>, transform_indices = @transform_6, window_bounds = array<i64: 11, 1>}, {transform_indices = @transform_7, window_bounds = array<i64: 11, 128>}]} {
    %c0 = arith.constant 0 : index
    %c0_0 = arith.constant 0 : index
    %0 = vector.load %arg1[%c0, %c0_0] : memref<7x128xf32, #tpu.memory_space<vmem>>, vector<7x128xf32>
    %c0_1 = arith.constant 0 : index
    %c0_2 = arith.constant 0 : index
    %1 = vector.load %arg2[%c0_1, %c0_2] : memref<32x7xf32, #tpu.memory_space<vmem>>, vector<32x7xf32>
    %c0_3 = arith.constant 0 : index
    %c0_4 = arith.constant 0 : index
    %2 = vector.load %arg4[%c0_3, %c0_4] : memref<32x32xf32, #tpu.memory_space<vmem>>, vector<32x32xf32>
    %c0_5 = arith.constant 0 : index
    %c0_6 = arith.constant 0 : index
    %3 = vector.load %arg6[%c0_5, %c0_6] : memref<11x32xf32, #tpu.memory_space<vmem>>, vector<11x32xf32>
    %c0_7 = arith.constant 0 : index
    %c0_8 = arith.constant 0 : index
    %4 = vector.load %arg3[%c0_7, %c0_8] : memref<32x1xf32, #tpu.memory_space<vmem>>, vector<32x1xf32>
    %c0_9 = arith.constant 0 : index
    %c0_10 = arith.constant 0 : index
    %5 = vector.load %arg5[%c0_9, %c0_10] : memref<32x1xf32, #tpu.memory_space<vmem>>, vector<32x1xf32>
    %c0_11 = arith.constant 0 : index
    %c0_12 = arith.constant 0 : index
    %6 = vector.load %arg7[%c0_11, %c0_12] : memref<11x1xf32, #tpu.memory_space<vmem>>, vector<11x1xf32>
    %cst = arith.constant dense<0.000000e+00> : vector<32x128xf32>
    %7 = tpu.matmul %1, %0, %cst {dimension_numbers = #tpu.dot_dimension_numbers<[1], [0], [0], [1], [0, 0, 1, 1], [], []>} : vector<32x7xf32>, vector<7x128xf32>, vector<32x128xf32> -> vector<32x128xf32>
    %8 = vector.broadcast %4 : vector<32x1xf32> to vector<32x128xf32>
    %9 = arith.addf %7, %8 : vector<32x128xf32>
    %10 = math.tanh %9 : vector<32x128xf32>
    %cst_13 = arith.constant dense<0.000000e+00> : vector<32x128xf32>
    %11 = tpu.matmul %2, %10, %cst_13 {dimension_numbers = #tpu.dot_dimension_numbers<[1], [0], [0], [1], [0, 0, 1, 1], [], []>} : vector<32x32xf32>, vector<32x128xf32>, vector<32x128xf32> -> vector<32x128xf32>
    %12 = vector.broadcast %5 : vector<32x1xf32> to vector<32x128xf32>
    %13 = arith.addf %11, %12 : vector<32x128xf32>
    %14 = math.tanh %13 : vector<32x128xf32>
    %cst_14 = arith.constant dense<0.000000e+00> : vector<11x128xf32>
    %15 = tpu.matmul %3, %14, %cst_14 {dimension_numbers = #tpu.dot_dimension_numbers<[1], [0], [0], [1], [0, 0, 1, 1], [], []>} : vector<11x32xf32>, vector<32x128xf32>, vector<11x128xf32> -> vector<11x128xf32>
    %16 = vector.broadcast %6 : vector<11x1xf32> to vector<11x128xf32>
    %17 = arith.addf %15, %16 : vector<11x128xf32>
    %18 = arith.negf %17 : vector<11x128xf32>
    %19 = math.exp %18 : vector<11x128xf32>
    %cst_15 = arith.constant 1.000000e+00 : f32
    %20 = vector.broadcast %cst_15 : f32 to vector<11x128xf32>
    %21 = arith.addf %20, %19 : vector<11x128xf32>
    %22 = arith.divf %20, %21 : vector<11x128xf32>
    %c0_16 = arith.constant 0 : index
    %c0_17 = arith.constant 0 : index
    %23 = vector.load %arg8[%c0_16, %c0_17] : memref<11x128xf32, #tpu.memory_space<vmem>>, vector<11x128xf32>
    tpu.vector_store %arg8[%c0_16, %c0_17], %22 {strides = array<i32>} : memref<11x128xf32, #tpu.memory_space<vmem>>, vector<11x128xf32>,
    return
  }
  func.func @transform_0(%arg0: i32) -> (i32, i32) {
    %c0_i32 = arith.constant 0 : i32
    %c0_i32_0 = arith.constant 0 : i32
    return %c0_i32, %arg0 : i32, i32
  }
  func.func @transform_1(%arg0: i32) -> (i32, i32) {
    %c0_i32 = arith.constant 0 : i32
    %c0_i32_0 = arith.constant 0 : i32
    %c0_i32_1 = arith.constant 0 : i32
    return %c0_i32, %c0_i32_0 : i32, i32
  }
  func.func @transform_2(%arg0: i32) -> (i32, i32) {
    %c0_i32 = arith.constant 0 : i32
    %c0_i32_0 = arith.constant 0 : i32
    %c0_i32_1 = arith.constant 0 : i32
    return %c0_i32, %c0_i32_0 : i32, i32
  }
  func.func @transform_3(%arg0: i32) -> (i32, i32) {
    %c0_i32 = arith.constant 0 : i32
    %c0_i32_0 = arith.constant 0 : i32
    %c0_i32_1 = arith.constant 0 : i32
    return %c0_i32, %c0_i32_0 : i32, i32
  }
  func.func @transform_4(%arg0: i32) -> (i32, i32) {
    %c0_i32 = arith.constant 0 : i32
    %c0_i32_0 = arith.constant 0 : i32
    %c0_i32_1 = arith.constant 0 : i32
    return %c0_i32, %c0_i32_0 : i32, i32
  }
  func.func @transform_5(%arg0: i32) -> (i32, i32) {
    %c0_i32 = arith.constant 0 : i32
    %c0_i32_0 = arith.constant 0 : i32
    %c0_i32_1 = arith.constant 0 : i32
    return %c0_i32, %c0_i32_0 : i32, i32
  }
  func.func @transform_6(%arg0: i32) -> (i32, i32) {
    %c0_i32 = arith.constant 0 : i32
    %c0_i32_0 = arith.constant 0 : i32
    %c0_i32_1 = arith.constant 0 : i32
    return %c0_i32, %c0_i32_0 : i32, i32
  }
  func.func @transform_7(%arg0: i32) -> (i32, i32) {
    %c0_i32 = arith.constant 0 : i32
    %c0_i32_0 = arith.constant 0 : i32
    return %c0_i32, %arg0 : i32, i32
  }
}

</mosaic_0001>

<bundles_post_ra>
// kernel: tpu_custom_call.1
= control target key start
LH: loop header
LB: loop body
LE: loop exit
PB: predicated region body
PF: predicated region fallthrough
CT: control target
= control target key end

     0   :  { %vm81_vm0 = vcmask 1046528   ;;  %vm68_vm1 = vcmask 56320   ;;  %v552_v5 = vmov 0   ;;  %s681_s0 = inlined_call_operand.vmem [shape: f32[7,128], index: 0, kind: input, shape index: {}]   ;;  %s682_s1 = inlined_call_operand.vmem [shape: f32[32,7], index: 1, kind: input, shape index: {}]   ;;  %s683_s2 = inlined_call_operand.vmem [shape: f32[32,1], index: 2, kind: input, shape index: {}]   ;;  %s684_s3 = inlined_call_operand.vmem [shape: f32[32,32], index: 3, kind: input, shape index: {}]   ;;  %s685_s4 = inlined_call_operand.vmem [shape: f32[32,1], index: 4, kind: input, shape index: {}]   ;;  %s686_s5 = inlined_call_operand.vmem [shape: f32[11,32], index: 5, kind: input, shape index: {}]   ;;  %s687_s6 = inlined_call_operand.vmem [shape: f32[11,1], index: 6, kind: input, shape index: {}]   ;;  %s688_s7 = inlined_call_operand.hbm [shape: f32[11,128], index: 7, kind: output, shape index: {}]  }
   0x1   :  { %v27_v0 = vld [vmem:[%s681_s0] sm:$0x7f]  ;;  %v29_v2 = vld [vmem:[%s682_s1 + $0x8] sm:$0xff]  ;;  %v30_v3 = vld [vmem:[%s682_s1 + $0x10] sm:$0xff]  ;;  %502 = vset.pattern.permute.xlu0 %v552_v5  ;;  %503 = vset.pattern.permute.xlu1 %v552_v5 }
   0x2   :  { %v28_v1 = vld [vmem:[%s682_s1] sm:$0xff]  ;;  %449 = vmatprep.subr.msk.mxu0 %vm81_vm0, %v27_v0  ;;  %v40_v6 = vld [vmem:[%s683_s2 + $0x10] sm:$0xff]  ;;  %v31_v7 = vld [vmem:[%s682_s1 + $0x18] sm:$0xff] }
   0x3   :  { %451 = vmatprep.mubr.msk.f32.mxu0 %vm68_vm1, %v28_v1  ;;  %v38_v4 = vld [vmem:[%s683_s2] sm:$0xff]  ;;  %450 = vmatpush3.msk.msra.mxu0 %vm81_vm0, %v27_v0  ;;  %v39_v8 = vld [vmem:[%s683_s2 + $0x8] sm:$0xff] }
   0x4   :  { %452 = vmatmul.mubr.msk.f32.vlgmr.msra.gmra.mrb[0].mxu0 %vm68_vm1, %v29_v2  ;;  %50 = vperm.xlu0 %502, %v38_v4  }
   0x5   :  { %454 = vmatprep.mubr.msk.f32.mxu0 %vm68_vm1, %v30_v3  ;;  %60 = vperm.xlu1 %503, %v40_v6  }
   0x6   :  { %12 = vsyncpa [#allocation3], 0  ;;  %v41_v9 = vld [vmem:[%s683_s2 + $0x18] sm:$0xff]  ;;  %v42_v10 = vld [vmem:[%s685_s4] sm:$0xff]  ;;  %vm194_vm2 = vcmask 261120   ;;  %s553_s13 = smov [#allocation2]  }
   0x7   :  { %v43_v11 = vld [vmem:[%s685_s4 + $0x8] sm:$0xff]  ;;  %v44_v12 = vld [vmem:[%s685_s4 + $0x10] sm:$0xff]  ;;  %v45_v13 = vld [vmem:[%s685_s4 + $0x18] sm:$0xff] }
   0x8   :  { %455 = vmatmul.mubr.msk.f32.gmra.mrb[2].mxu0 %vm68_vm1, %v31_v7  ;;  %55 = vperm.xlu0 %502, %v39_v8   ;;  %v46_v14 = vld [vmem:[%s687_s6] sm:$0xff]  ;;  %v47_v15 = vld [vmem:[%s687_s6 + $0x8] sm:$0x7]  ;;  %v34_v36 = vld [vmem:[%s684_s3 + $0x10] sm:$0xff] }
   0x9   :  { %65 = vperm.xlu1 %503, %v41_v9   ;;  %v32_v16 = vld [vmem:[%s684_s3] sm:$0xff]  ;;  %v33_v35 = vld [vmem:[%s684_s3 + $0x8] sm:$0xff]  ;;  %v35_v37 = vld [vmem:[%s684_s3 + $0x18] sm:$0xff] }
   0xa   :  { %465 = vmatprep.mubr.msk.f32.mxu1 %vm194_vm2, %v32_v16  ;;  %v36_v38 = vld [vmem:[%s686_s5] sm:$0xff]  ;;  %v37_v57 = vld [vmem:[%s686_s5 + $0x8] sm:$0x7]  ;;  %s406_s5 = sshll.u32 %s553_s13, 4  ;;  %s407_s5 = int_to_ptr.vmem [resolvable:$true] %s406_s5 }
   0xb   :  { %479 = vmatprep.mubr.msk.f32.mxu0 %vm194_vm2, %v36_v38  ;;  %s528_s14 = scalar_lea.vmem %s407_s5, 256  ;;  %p533_p1 = scmp.lt.s32.totalorder %s407_s5, %s407_s5 }
   0xc   :  { %176 = vperm.xlu0 %502, %v42_v10   ;;  %p529_p0 = scmp.ne.s32.totalorder %s407_s5, %s528_s14  ;;  %p534_p2 = scmp.lt.s32.totalorder %s528_s14, %s528_s14 }
   0xd   :  { %181 = vperm.xlu1 %503, %v43_v11  }
   0xe   :  { %p535_p3 = por %p534_p2, %p533_p1 }
  0x10   :  { %186 = vperm.xlu0 %502, %v44_v12   ;;  %p536_p4 = pnand %p535_p3, %p529_p0 }
  0x11   :  { %191 = vperm.xlu1 %503, %v45_v13  }
  0x14   :  { %298 = vperm.xlu0 %502, %v46_v14  }
  0x15   :  { %303 = vperm.xlu1 %503, %v47_v15  }
  0x83   :  { %v51_v17 = vpop.permute.xlu0 %50 }
  0x84   :  { %v61_v18 = vpop.permute.xlu1 %60 }
  0x87   :  { %v56_v19 = vpop.permute.xlu0 %55 }
  0x88   :  { %v66_v24 = vpop.permute.xlu1 %65 }
  0x8b   :  { %v177_v40 = vpop.permute.xlu0 %176 }
  0x8c   :  { %v182_v39 = vpop.permute.xlu1 %181 }
  0x8f   :  { %v187_v47 = vpop.permute.xlu0 %186 }
  0x90   :  { %v192_v45 = vpop.permute.xlu1 %191 }
  0x93   :  { %v299_v60 = vpop.permute.xlu0 %298 }
  0x94   :  { %v304_v58 = vpop.permute.xlu1 %303 }
  0xd7   :  { %v453_v20 = vpop.f32.mrb[0].mxu0 }
  0xd8   :  { %v157_v21 = vadd.f32 %v453_v20, %v56_v19  ;;  %v151_v22 = vpop.f32.mrb[1].mxu0 }
  0xd9   :  { %v152_v23 = vadd.f32 %v151_v22, %v51_v17 }
  0xda   :  { %504 = vtanh.f32 %v157_v21 }
  0xdb   :  { %506 = vtanh.f32 %v152_v23  ;;  %v456_v25 = vpop.f32.mrb[2].mxu0 }
  0xdc   :  { %v167_v26 = vadd.f32 %v456_v25, %v66_v24  ;;  %v161_v27 = vpop.f32.mrb[3].mxu0 }
  0xdd   :  { %v162_v28 = vadd.f32 %v161_v27, %v61_v18 }
  0xde   :  { %508 = vtanh.f32 %v167_v26 }
  0xdf   :  { %510 = vtanh.f32 %v162_v28 }
  0xe4   :  { %v505_v29 = vpop.eup %504 }
  0xe5   :  { %v507_v30 = vpop.eup %506 }
  0xe6   :  { %v482_v31 = vpack.c.bf16 %v505_v29, %v507_v30 }
  0xe8   :  { %v509_v32 = vpop.eup %508  ;;  %483 = vmatprep.subr.bf16.mxu1 %v482_v31 }
  0xe9   :  { %v511_v33 = vpop.eup %510  ;;  %485 = vmatpush3.bf16.msra.mxu1 %v482_v31 }
  0xea   :  { %v486_v34 = vpack.c.bf16 %v509_v32, %v511_v33 }
  0xec   :  { %487 = vmatprep.subr.bf16.mxu1 %v486_v34 }
  0xed   :  { %489 = vmatpush3.bf16.msra.mxu1 %v486_v34 }
  0xf0   :  { %466 = vmatmul.mubr.msk.f32.vlgmr.msra.gmra.mrb[0].mxu1 %vm194_vm2, %v33_v35 }
  0xf1   :  { %468 = vmatprep.mubr.msk.f32.mxu1 %vm194_vm2, %v34_v36 }
  0xf4   :  { %469 = vmatmul.mubr.msk.f32.gmra.mrb[2].mxu1 %vm194_vm2, %v35_v37 }
 0x1c3   :  { %v467_v41 = vpop.f32.mrb[0].mxu1 }
 0x1c4   :  { %v279_v42 = vadd.f32 %v467_v41, %v182_v39  ;;  %v273_v43 = vpop.f32.mrb[1].mxu1 }
 0x1c5   :  { %v274_v44 = vadd.f32 %v273_v43, %v177_v40 }
 0x1c6   :  { %512 = vtanh.f32 %v279_v42 }
 0x1c7   :  { %514 = vtanh.f32 %v274_v44  ;;  %v470_v46 = vpop.f32.mrb[2].mxu1 }
 0x1c8   :  { %v289_v48 = vadd.f32 %v470_v46, %v192_v45  ;;  %v283_v49 = vpop.f32.mrb[3].mxu1 }
 0x1c9   :  { %v284_v50 = vadd.f32 %v283_v49, %v187_v47 }
 0x1ca   :  { %516 = vtanh.f32 %v289_v48 }
 0x1cb   :  { %518 = vtanh.f32 %v284_v50 }
 0x1d0   :  { %v513_v51 = vpop.eup %512 }
 0x1d1   :  { %v515_v52 = vpop.eup %514 }
 0x1d2   :  { %v490_v53 = vpack.c.bf16 %v513_v51, %v515_v52 }
 0x1d4   :  { %v517_v54 = vpop.eup %516  ;;  %491 = vmatprep.subr.bf16.mxu0 %v490_v53 }
 0x1d5   :  { %v519_v55 = vpop.eup %518  ;;  %493 = vmatpush3.bf16.msra.mxu0 %v490_v53 }
 0x1d6   :  { %v494_v56 = vpack.c.bf16 %v517_v54, %v519_v55 }
 0x1d8   :  { %495 = vmatprep.subr.bf16.mxu0 %v494_v56 }
 0x1d9   :  { %497 = vmatpush3.bf16.msra.mxu0 %v494_v56 }
 0x1dc   :  { %480 = vmatmul.mubr.msk.f32.vlgmr.msra.gmra.mrb[4].mxu0 %vm194_vm2, %v37_v57 }
 0x2af   :  { %v481_v59 = vpop.f32.mrb[4].mxu0 }
 0x2b0   :  { %v384_v61 = vadd.f32 %v481_v59, %v304_v58  ;;  %v378_v62 = vpop.f32.mrb[5].mxu0 }
 0x2b1   :  { %v379_v63 = vadd.f32 %v378_v62, %v299_v60 }
 0x2b2   :  { %v429_v0 = vmul.f32 -1.442695, %v384_v61 }
 0x2b3   :  { %v428_v1 = vmul.f32 -1.442695, %v379_v63 }
 0x2b4   :  { %520 = vpow2.f32 %v429_v0 }
 0x2b5   :  { %522 = vpow2.f32 %v428_v1 }
 0x2be   :  { %v521_v2 = vpop.eup %520 }
 0x2bf   :  { %v523_v3 = vpop.eup %522  ;;  %v394_v4 = vadd.f32 1.0, %v521_v2 }
 0x2c0   :  { %v393_v5 = vadd.f32 1.0, %v523_v3 }
 0x2c1   :  { %524 = vrcp.f32 %v394_v4 }
 0x2c2   :  { %526 = vrcp.f32 %v393_v5 }
 0x2cb   :  { %v525_v6 = vpop.eup %524 }
 0x2cc   :  { %v527_v7 = vpop.eup %526  ;;  %400 = vst [vmem:[#allocation2 + $0x8] sm:$0x7] %v525_v6 }
 0x2cd   :  { %399 = vst [vmem:[#allocation2] sm:$0xff] %v527_v7 }
 0x2ce   :  { %539 = shalt.err (!%p536_p4)
}
 0x2cf   :  { %s540_s17 = scalar_lea.hbm %s688_s7, 256 }
 0x2d0   :  { %p541_p5 = scmp.ne.s32.totalorder %s688_s7, %s540_s17  ;;  %p544_p6 = scmp.lt.u32.totalorder %s540_s17, %s688_s7 }
 0x2d2   :  { %p546_p7 = pnand %p544_p6, %p541_p5 }
 0x2d4   :  { %549 = shalt.err (!%p546_p7)
}
 0x2d5   :  { %s554_s21 = smov 128   ;;  %s555_s22 = smov 8  }
 0x2d6   :  { %412 = dma.vmem_to_hbm [thread:$0]  %s407_s5, 256, %s688_s7, [#allocation3], %s554_s21, %s554_s21, %s555_s22  }
 0x2d7   :  { %550 = dma.done.wait [#allocation3], 256  }
 0x2d8   :  { %551 = vsyncadd [#allocation3], 4294967040 }
 0x2d9   :  { %416 = vsyncpa [#allocation3], 1 }

</bundles_post_ra>
